<compile_context>
chip_gen: v6e
topology: v6e:2x2x1
jax: 0.10.0
libtpu: 0.0.40
codegen_flags: <defaults>
</compile_context>

<pallas_src>
import functools

import jax
import jax.numpy as jnp
from jax.experimental import pallas as pl
from jax.experimental.pallas import tpu as pltpu


def _two_head_kernel(x_ref, w_ref, b_ref, logit_ref, soft_ref, *, num_heads, k):
    # x_ref:     (B, D)      features (shared by every head)
    # w_ref:     (D, H*K)    pre-transposed, head-packed Linear weights
    # b_ref:     (1, H*K)    head-packed biases
    # logit_ref: (B, H*K)    fused logits output
    # soft_ref:  (B, H*K)    fused per-head softmax output
    x = x_ref[...]
    w = w_ref[...]
    b = b_ref[...]

    # Single fused Linear for all heads: (B, D) @ (D, H*K) + (1, H*K)
    logits = jnp.dot(x, w, preferred_element_type=jnp.float32) + b
    logit_ref[...] = logits.astype(logit_ref.dtype)

    # Per-head softmax over the K columns belonging to each head (PyTorch
    # Softmax(dim=1) on a [B, K] tensor == axis=-1 on each static slice).
    for h in range(num_heads):
        lo = h * k
        sl = logits[:, lo:lo + k]
        m = jnp.max(sl, axis=-1, keepdims=True)
        e = jnp.exp(sl - m)
        denom = jnp.sum(e, axis=-1, keepdims=True)
        soft_ref[:, lo:lo + k] = (e * pl.reciprocal(denom, approx=False)).astype(
            soft_ref.dtype)


def dial_two_head_forward(x, weights, biases, kmeans_use_features=False):
    """Pallas implementation of DialResNet18TwoHeadHead.forward (semisup=False).

    x:       [B, D] float32  (D = 512 * DialBasicBlock.expansion = 512)
    weights: [H, K, D] float32  (PyTorch nn.Linear convention, H = num_sub_heads)
    biases:  [H, K]    float32
    Returns (results, results_logit): lists of [B, K] arrays, matching the
    PyTorch module's return structure.
    """
    B, D = x.shape
    H, K, Dw = weights.shape
    assert D == Dw

    if kmeans_use_features:
        # PyTorch: results.append(x) per head, results_logit stays empty.
        return [x for _ in range(H)], []

    HK = H * K
    # Wrapper-side layout plumbing (free in XLA):
    #   W: [H, K, D] -> [D, H, K] -> [D, H*K]   so that
    #   (x @ W_packed)[:, h*K:(h+1)*K] == x @ weights[h].T
    w_packed = jnp.transpose(weights, (2, 0, 1)).reshape(D, HK)
    b_packed = biases.reshape(1, HK)

    kernel = functools.partial(_two_head_kernel, num_heads=H, k=K)

    logits_flat, soft_flat = pl.pallas_call(
        kernel,
        out_shape=(
            jax.ShapeDtypeStruct((B, HK), jnp.float32),  # logits
            jax.ShapeDtypeStruct((B, HK), jnp.float32),  # softmax
        ),
        grid_spec=pltpu.PrefetchScalarGridSpec(
            num_scalar_prefetch=0,
            grid=(1,),  # single fused step: everything fits in VMEM easily
            in_specs=[
                pl.BlockSpec((B, D), lambda i: (0, 0)),    # x
                pl.BlockSpec((D, HK), lambda i: (0, 0)),   # packed weights
                pl.BlockSpec((1, HK), lambda i: (0, 0)),   # packed bias
            ],
            out_specs=[
                pl.BlockSpec((B, HK), lambda i: (0, 0)),   # logits
                pl.BlockSpec((B, HK), lambda i: (0, 0)),   # softmax
            ],
        ),
        compiler_params=pltpu.CompilerParams(
            dimension_semantics=("arbitrary",),
        ),
    )(x, w_packed, b_packed)

    # One reshape/transpose to (H, B, K); list() splits only along the leading
    # head axis to preserve the module's list-of-tensors return structure.
    logits_stacked = jnp.transpose(logits_flat.reshape(B, H, K), (1, 0, 2))
    soft_stacked = jnp.transpose(soft_flat.reshape(B, H, K), (1, 0, 2))
    results = list(soft_stacked)
    results_logit = list(logits_stacked)
    return results, results_logit


if __name__ == "__main__":
    # Shapes implied by the module: in_features = 512 * expansion(=1) = 512.
    B = 8              # batch
    D = 512            # 512 * DialBasicBlock.expansion
    K = 10             # output_k
    H = 2              # num_sub_heads

    key = jax.random.PRNGKey(0)
    kx, kw, kb = jax.random.split(key, 3)

    x = jax.random.normal(kx, (B, D), dtype=jnp.float32)
    # Deterministic nn.Linear-style init (uniform in +-1/sqrt(D)).
    bound = 1.0 / (D ** 0.5)
    weights = jax.random.uniform(kw, (H, K, D), minval=-bound, maxval=bound,
                                 dtype=jnp.float32)
    biases = jax.random.uniform(kb, (H, K), minval=-bound, maxval=bound,
                                dtype=jnp.float32)

    results, results_logit = dial_two_head_forward(x, weights, biases)
    jax.block_until_ready(results)
    jax.block_until_ready(results_logit)

    # Sanity check against plain-JAX reference.
    for h in range(H):
        ref_logit = x @ weights[h].T + biases[h]
        ref_soft = jax.nn.softmax(ref_logit, axis=1)
        assert jnp.allclose(results_logit[h], ref_logit, atol=1e-4, rtol=1e-4)
        assert jnp.allclose(results[h], ref_soft, atol=1e-5, rtol=1e-5)
        assert jnp.allclose(jnp.sum(results[h], axis=1), 1.0, atol=1e-5)

    # kmeans_use_features=True path (pure passthrough, no kernel needed).
    feats, empty_logits = dial_two_head_forward(x, weights, biases,
                                                kmeans_use_features=True)
    assert len(feats) == H and len(empty_logits) == 0

    # TODO(synk): biggest remaining win is fusing this head into the producing
    # avgpool/flatten kernel (removes one HBM round-trip of x + a launch).
    print("KERNEL_OK")
</pallas_src>

<mosaic_0001>
module attributes {stable_mosaic.version = 11 : i64} {
  func.func @_two_head_kernel(%arg0: i32, %arg1: memref<8x512xf32, #tpu.memory_space<vmem>>, %arg2: memref<512x20xf32, #tpu.memory_space<vmem>>, %arg3: memref<1x20xf32, #tpu.memory_space<vmem>>, %arg4: memref<8x20xf32, #tpu.memory_space<vmem>>, %arg5: memref<8x20xf32, #tpu.memory_space<vmem>>) attributes {dimension_semantics = [#tpu.dimension_semantics<arbitrary>], iteration_bounds = array<i64: 1>, scalar_prefetch = 0 : i64, scratch_operands = 0 : i64, tpu.core_type = #tpu.core_type<tc>, window_params = [{pipeline_mode = #tpu.pipeline_mode<synchronous>, transform_indices = @transform_0, window_bounds = array<i64: 8, 512>}, {pipeline_mode = #tpu.pipeline_mode<synchronous>, transform_indices = @transform_1, window_bounds = array<i64: 512, 20>}, {pipeline_mode = #tpu.pipeline_mode<synchronous>, transform_indices = @transform_2, window_bounds = array<i64: 1, 20>}, {pipeline_mode = #tpu.pipeline_mode<synchronous>, transform_indices = @transform_3, window_bounds = array<i64: 8, 20>}, {pipeline_mode = #tpu.pipeline_mode<synchronous>, transform_indices = @transform_4, window_bounds = array<i64: 8, 20>}]} {
    %c0 = arith.constant 0 : index
    %c0_0 = arith.constant 0 : index
    %0 = vector.load %arg1[%c0, %c0_0] : memref<8x512xf32, #tpu.memory_space<vmem>>, vector<8x512xf32>
    %c0_1 = arith.constant 0 : index
    %c0_2 = arith.constant 0 : index
    %1 = vector.load %arg2[%c0_1, %c0_2] : memref<512x20xf32, #tpu.memory_space<vmem>>, vector<512x20xf32>
    %c0_3 = arith.constant 0 : index
    %c0_4 = arith.constant 0 : index
    %2 = vector.load %arg3[%c0_3, %c0_4] : memref<1x20xf32, #tpu.memory_space<vmem>>, vector<1x20xf32>
    %cst = arith.constant dense<0.000000e+00> : vector<8x20xf32>
    %3 = tpu.matmul %0, %1, %cst {dimension_numbers = #tpu.dot_dimension_numbers<[1], [0], [0], [1], [0, 0, 1, 1], [], []>} : vector<8x512xf32>, vector<512x20xf32>, vector<8x20xf32> -> vector<8x20xf32>
    %4 = vector.broadcast %2 : vector<1x20xf32> to vector<8x20xf32>
    %5 = arith.addf %3, %4 : vector<8x20xf32>
    %c0_5 = arith.constant 0 : index
    %c0_6 = arith.constant 0 : index
    %6 = vector.load %arg4[%c0_5, %c0_6] : memref<8x20xf32, #tpu.memory_space<vmem>>, vector<8x20xf32>
    tpu.vector_store %arg4[%c0_5, %c0_6], %5 {strides = array<i32>} : memref<8x20xf32, #tpu.memory_space<vmem>>, vector<8x20xf32>,
    %7 = vector.extract_strided_slice %5 {offsets = [0, 0], sizes = [8, 10], strides = [1, 1]} : vector<8x20xf32> to vector<8x10xf32>
    %cst_7 = arith.constant dense<0xFF800000> : vector<8xf32>
    %8 = vector.multi_reduction <maximumf>, %7, %cst_7 [1] : vector<8x10xf32> to vector<8xf32>
    %9 = vector.shape_cast %8 : vector<8xf32> to vector<8x1xf32>
    %10 = vector.broadcast %9 : vector<8x1xf32> to vector<8x10xf32>
    %11 = arith.subf %7, %10 : vector<8x10xf32>
    %12 = math.exp %11 : vector<8x10xf32>
    %cst_8 = arith.constant dense<0.000000e+00> : vector<8xf32>
    %13 = vector.multi_reduction <add>, %12, %cst_8 [1] : vector<8x10xf32> to vector<8xf32>
    %14 = vector.shape_cast %13 : vector<8xf32> to vector<8x1xf32>
    %15 = tpu.reciprocal %14 : vector<8x1xf32> -> vector<8x1xf32>
    %16 = vector.broadcast %15 : vector<8x1xf32> to vector<8x10xf32>
    %17 = arith.mulf %12, %16 : vector<8x10xf32>
    %c0_9 = arith.constant 0 : index
    %c0_10 = arith.constant 0 : index
    %18 = vector.load %arg5[%c0_9, %c0_10] : memref<8x20xf32, #tpu.memory_space<vmem>>, vector<8x10xf32>
    tpu.vector_store %arg5[%c0_9, %c0_10], %17 {strides = array<i32>} : memref<8x20xf32, #tpu.memory_space<vmem>>, vector<8x10xf32>,
    %19 = vector.extract_strided_slice %5 {offsets = [0, 10], sizes = [8, 10], strides = [1, 1]} : vector<8x20xf32> to vector<8x10xf32>
    %cst_11 = arith.constant dense<0xFF800000> : vector<8xf32>
    %20 = vector.multi_reduction <maximumf>, %19, %cst_11 [1] : vector<8x10xf32> to vector<8xf32>
    %21 = vector.shape_cast %20 : vector<8xf32> to vector<8x1xf32>
    %22 = vector.broadcast %21 : vector<8x1xf32> to vector<8x10xf32>
    %23 = arith.subf %19, %22 : vector<8x10xf32>
    %24 = math.exp %23 : vector<8x10xf32>
    %cst_12 = arith.constant dense<0.000000e+00> : vector<8xf32>
    %25 = vector.multi_reduction <add>, %24, %cst_12 [1] : vector<8x10xf32> to vector<8xf32>
    %26 = vector.shape_cast %25 : vector<8xf32> to vector<8x1xf32>
    %27 = tpu.reciprocal %26 : vector<8x1xf32> -> vector<8x1xf32>
    %28 = vector.broadcast %27 : vector<8x1xf32> to vector<8x10xf32>
    %29 = arith.mulf %24, %28 : vector<8x10xf32>
    %c0_13 = arith.constant 0 : index
    %c10 = arith.constant 10 : index
    %30 = vector.load %arg5[%c0_13, %c10] : memref<8x20xf32, #tpu.memory_space<vmem>>, vector<8x10xf32>
    tpu.vector_store %arg5[%c0_13, %c10], %29 {strides = array<i32>} : memref<8x20xf32, #tpu.memory_space<vmem>>, vector<8x10xf32>,
    return
  }
  func.func @transform_0(%arg0: i32) -> (i32, i32) {
    %c0_i32 = arith.constant 0 : i32
    %c0_i32_0 = arith.constant 0 : i32
    %c0_i32_1 = arith.constant 0 : i32
    return %c0_i32, %c0_i32_0 : i32, i32
  }
  func.func @transform_1(%arg0: i32) -> (i32, i32) {
    %c0_i32 = arith.constant 0 : i32
    %c0_i32_0 = arith.constant 0 : i32
    %c0_i32_1 = arith.constant 0 : i32
    return %c0_i32, %c0_i32_0 : i32, i32
  }
  func.func @transform_2(%arg0: i32) -> (i32, i32) {
    %c0_i32 = arith.constant 0 : i32
    %c0_i32_0 = arith.constant 0 : i32
    %c0_i32_1 = arith.constant 0 : i32
    return %c0_i32, %c0_i32_0 : i32, i32
  }
  func.func @transform_3(%arg0: i32) -> (i32, i32) {
    %c0_i32 = arith.constant 0 : i32
    %c0_i32_0 = arith.constant 0 : i32
    %c0_i32_1 = arith.constant 0 : i32
    return %c0_i32, %c0_i32_0 : i32, i32
  }
  func.func @transform_4(%arg0: i32) -> (i32, i32) {
    %c0_i32 = arith.constant 0 : i32
    %c0_i32_0 = arith.constant 0 : i32
    %c0_i32_1 = arith.constant 0 : i32
    return %c0_i32, %c0_i32_0 : i32, i32
  }
}

</mosaic_0001>

<bundles_post_ra>
// kernel: tpu_custom_call.1
= control target key start
LH: loop header
LB: loop body
LE: loop exit
PB: predicated region body
PF: predicated region fallthrough
CT: control target
= control target key end

     0   :  { %10 = vsyncpa [#allocation3], 0  ;;  %s666_s0 = inlined_call_operand.vmem [shape: f32[8,512], index: 0, kind: input, shape index: {}]   ;;  %s667_s1 = inlined_call_operand.vmem [shape: f32[512,20], index: 1, kind: input, shape index: {}]   ;;  %s668_s2 = inlined_call_operand.vmem [shape: f32[1,20], index: 2, kind: input, shape index: {}]   ;;  %s669_s3 = inlined_call_operand.hbm [shape: f32[8,20], index: 3, kind: output, shape index: {0}]   ;;  %s670_s4 = inlined_call_operand.hbm [shape: f32[8,20], index: 4, kind: output, shape index: {1}]  }
   0x1   :  { %v53_v0 = vld [vmem:[%s667_s1 + $0xf8] sm:$0xff]  ;;  %v52_v4 = vld [vmem:[%s667_s1 + $0xf0] sm:$0xff]  ;;  %v51_v8 = vld [vmem:[%s667_s1 + $0xe8] sm:$0xff] }
   0x2   :  { %v85_v1 = vld [vmem:[%s667_s1 + $0x1f8] sm:$0xff]  ;;  %294 = vmatprep.subr.mxu0 %v53_v0  ;;  %v84_v5 = vld [vmem:[%s667_s1 + $0x1f0] sm:$0xff]  ;;  %v83_v9 = vld [vmem:[%s667_s1 + $0x1e8] sm:$0xff] }
   0x3   :  { %v37_v2 = vld [vmem:[%s667_s1 + $0x78] sm:$0xff]  ;;  %329 = vmatprep.subr.mxu1 %v85_v1  ;;  %v36_v6 = vld [vmem:[%s667_s1 + $0x70] sm:$0xff]  ;;  %v35_v10 = vld [vmem:[%s667_s1 + $0x68] sm:$0xff] }
   0x4   :  { %v69_v3 = vld [vmem:[%s667_s1 + $0x178] sm:$0xff]  ;;  %295 = vmatpush3.msra.mxu0 %v37_v2  ;;  %v68_v7 = vld [vmem:[%s667_s1 + $0x170] sm:$0xff]  ;;  %v67_v11 = vld [vmem:[%s667_s1 + $0x168] sm:$0xff] }
   0x5   :  { %330 = vmatpush3.msra.mxu1 %v69_v3  ;;  %296 = vmatprep.subr.mxu0 %v52_v4  ;;  %v50_v12 = vld [vmem:[%s667_s1 + $0xe0] sm:$0xff]  ;;  %v49_v16 = vld [vmem:[%s667_s1 + $0xd8] sm:$0xff]  ;;  %v48_v20 = vld [vmem:[%s667_s1 + $0xd0] sm:$0xff] }
   0x6   :  { %331 = vmatprep.subr.mxu1 %v84_v5  ;;  %297 = vmatpush3.msra.mxu0 %v36_v6  ;;  %v82_v13 = vld [vmem:[%s667_s1 + $0x1e0] sm:$0xff]  ;;  %v81_v17 = vld [vmem:[%s667_s1 + $0x1d8] sm:$0xff]  ;;  %v80_v21 = vld [vmem:[%s667_s1 + $0x1d0] sm:$0xff] }
   0x7   :  { %332 = vmatpush3.msra.mxu1 %v68_v7  ;;  %298 = vmatprep.subr.mxu0 %v51_v8  ;;  %v34_v14 = vld [vmem:[%s667_s1 + $0x60] sm:$0xff]  ;;  %v33_v18 = vld [vmem:[%s667_s1 + $0x58] sm:$0xff]  ;;  %v32_v22 = vld [vmem:[%s667_s1 + $0x50] sm:$0xff] }
   0x8   :  { %333 = vmatprep.subr.mxu1 %v83_v9  ;;  %v66_v15 = vld [vmem:[%s667_s1 + $0x160] sm:$0xff]  ;;  %299 = vmatpush3.msra.mxu0 %v35_v10  ;;  %v65_v19 = vld [vmem:[%s667_s1 + $0x158] sm:$0xff]  ;;  %v64_v23 = vld [vmem:[%s667_s1 + $0x150] sm:$0xff] }
   0x9   :  { %334 = vmatpush3.msra.mxu1 %v67_v11  ;;  %300 = vmatprep.subr.mxu0 %v50_v12  ;;  %v47_v24 = vld [vmem:[%s667_s1 + $0xc8] sm:$0xff]  ;;  %v46_v28 = vld [vmem:[%s667_s1 + $0xc0] sm:$0xff]  ;;  %v45_v32 = vld [vmem:[%s667_s1 + $0xb8] sm:$0xff] }
   0xa   :  { %335 = vmatprep.subr.mxu1 %v82_v13  ;;  %301 = vmatpush3.msra.mxu0 %v34_v14  ;;  %v79_v25 = vld [vmem:[%s667_s1 + $0x1c8] sm:$0xff]  ;;  %v78_v29 = vld [vmem:[%s667_s1 + $0x1c0] sm:$0xff]  ;;  %v77_v33 = vld [vmem:[%s667_s1 + $0x1b8] sm:$0xff] }
   0xb   :  { %336 = vmatpush3.msra.mxu1 %v66_v15  ;;  %302 = vmatprep.subr.mxu0 %v49_v16  ;;  %v31_v26 = vld [vmem:[%s667_s1 + $0x48] sm:$0xff]  ;;  %v30_v30 = vld [vmem:[%s667_s1 + $0x40] sm:$0xff]  ;;  %v29_v34 = vld [vmem:[%s667_s1 + $0x38] sm:$0xff] }
   0xc   :  { %337 = vmatprep.subr.mxu1 %v81_v17  ;;  %303 = vmatpush3.msra.mxu0 %v33_v18  ;;  %v63_v27 = vld [vmem:[%s667_s1 + $0x148] sm:$0xff]  ;;  %v62_v31 = vld [vmem:[%s667_s1 + $0x140] sm:$0xff]  ;;  %v61_v35 = vld [vmem:[%s667_s1 + $0x138] sm:$0xff] }
   0xd   :  { %338 = vmatpush3.msra.mxu1 %v65_v19  ;;  %304 = vmatprep.subr.mxu0 %v48_v20  ;;  %v44_v36 = vld [vmem:[%s667_s1 + $0xb0] sm:$0xff]  ;;  %v43_v40 = vld [vmem:[%s667_s1 + $0xa8] sm:$0xff]  ;;  %v42_v44 = vld [vmem:[%s667_s1 + $0xa0] sm:$0xff] }
   0xe   :  { %339 = vmatprep.subr.mxu1 %v80_v21  ;;  %305 = vmatpush3.msra.mxu0 %v32_v22  ;;  %v76_v37 = vld [vmem:[%s667_s1 + $0x1b0] sm:$0xff]  ;;  %v75_v41 = vld [vmem:[%s667_s1 + $0x1a8] sm:$0xff]  ;;  %v74_v45 = vld [vmem:[%s667_s1 + $0x1a0] sm:$0xff] }
   0xf   :  { %340 = vmatpush3.msra.mxu1 %v64_v23  ;;  %306 = vmatprep.subr.mxu0 %v47_v24  ;;  %v28_v38 = vld [vmem:[%s667_s1 + $0x30] sm:$0xff]  ;;  %v27_v42 = vld [vmem:[%s667_s1 + $0x28] sm:$0xff]  ;;  %v26_v46 = vld [vmem:[%s667_s1 + $0x20] sm:$0xff] }
  0x10   :  { %341 = vmatprep.subr.mxu1 %v79_v25  ;;  %307 = vmatpush3.msra.mxu0 %v31_v26  ;;  %v60_v39 = vld [vmem:[%s667_s1 + $0x130] sm:$0xff]  ;;  %v59_v43 = vld [vmem:[%s667_s1 + $0x128] sm:$0xff]  ;;  %v58_v47 = vld [vmem:[%s667_s1 + $0x120] sm:$0xff] }
  0x11   :  { %342 = vmatpush3.msra.mxu1 %v63_v27  ;;  %308 = vmatprep.subr.mxu0 %v46_v28  ;;  %v41_v48 = vld [vmem:[%s667_s1 + $0x98] sm:$0xff] }
  0x12   :  { %343 = vmatprep.subr.mxu1 %v78_v29  ;;  %309 = vmatpush3.msra.mxu0 %v30_v30  ;;  %v73_v49 = vld [vmem:[%s667_s1 + $0x198] sm:$0xff] }
  0x13   :  { %344 = vmatpush3.msra.mxu1 %v62_v31  ;;  %310 = vmatprep.subr.mxu0 %v45_v32 }
  0x14   :  { %345 = vmatprep.subr.mxu1 %v77_v33  ;;  %311 = vmatpush3.msra.mxu0 %v29_v34 }
  0x15   :  { %346 = vmatpush3.msra.mxu1 %v61_v35  ;;  %312 = vmatprep.subr.mxu0 %v44_v36 }
  0x16   :  { %347 = vmatprep.subr.mxu1 %v76_v37  ;;  %313 = vmatpush3.msra.mxu0 %v28_v38 }
  0x17   :  { %348 = vmatpush3.msra.mxu1 %v60_v39  ;;  %314 = vmatprep.subr.mxu0 %v43_v40 }
  0x18   :  { %349 = vmatprep.subr.mxu1 %v75_v41  ;;  %315 = vmatpush3.msra.mxu0 %v27_v42 }
  0x19   :  { %350 = vmatpush3.msra.mxu1 %v59_v43 }
  0x1a   :  { %11 = vsyncpa [#allocation5], 0  ;;  %316 = vmatprep.subr.mxu0 %v42_v44  ;;  %351 = vmatprep.subr.mxu1 %v74_v45  ;;  %v25_v50 = vld [vmem:[%s667_s1 + $0x18] sm:$0xff]  ;;  %v40_v52 = vld [vmem:[%s667_s1 + $0x90] sm:$0xff]  ;;  %vm248_vm0 = vcmask 162896   ;;  %vm233_vm1 = vcmask 162816  }
  0x1b   :  { %v57_v51 = vld [vmem:[%s667_s1 + $0x118] sm:$0xff]  ;;  %317 = vmatpush3.msra.mxu0 %v26_v46  ;;  %352 = vmatpush3.msra.mxu1 %v58_v47  ;;  %v72_v53 = vld [vmem:[%s667_s1 + $0x190] sm:$0xff]  ;;  %v39_v56 = vld [vmem:[%s667_s1 + $0x88] sm:$0xff]  ;;  %vm235_vm2 = vcmask 80896  }
  0x1c   :  { %318 = vmatprep.subr.mxu0 %v41_v48  ;;  %353 = vmatprep.subr.mxu1 %v73_v49  ;;  %v24_v54 = vld [vmem:[%s667_s1 + $0x10] sm:$0xff]  ;;  %v71_v57 = vld [vmem:[%s667_s1 + $0x188] sm:$0xff]  ;;  %v38_v60 = vld [vmem:[%s667_s1 + $0x80] sm:$0xff] }
  0x1d   :  { %v56_v55 = vld [vmem:[%s667_s1 + $0x110] sm:$0xff]  ;;  %319 = vmatpush3.msra.mxu0 %v25_v50  ;;  %354 = vmatpush3.msra.mxu1 %v57_v51  ;;  %v23_v58 = vld [vmem:[%s667_s1 + $0x8] sm:$0xff]  ;;  %v70_v61 = vld [vmem:[%s667_s1 + $0x180] sm:$0xff] }
  0x1e   :  { %320 = vmatprep.subr.mxu0 %v40_v52  ;;  %355 = vmatprep.subr.mxu1 %v72_v53  ;;  %v55_v59 = vld [vmem:[%s667_s1 + $0x108] sm:$0xff]  ;;  %v22_v62 = vld [vmem:[%s667_s1] sm:$0xff]  ;;  %v21_v1 = vld [vmem:[%s666_s0 + $0x18] sm:$0xff] }
  0x1f   :  { %321 = vmatpush3.msra.mxu0 %v24_v54  ;;  %356 = vmatpush3.msra.mxu1 %v56_v55  ;;  %v19_v63 = vld [vmem:[%s666_s0 + $0x8] sm:$0xff]  ;;  %v54_v0 = vld [vmem:[%s667_s1 + $0x100] sm:$0xff]  ;;  %v20_v3 = vld [vmem:[%s666_s0 + $0x10] sm:$0xff] }
  0x20   :  { %322 = vmatprep.subr.mxu0 %v39_v56  ;;  %357 = vmatprep.subr.mxu1 %v71_v57  ;;  %v18_v2 = vld [vmem:[%s666_s0] sm:$0xff]  ;;  %s419_s0 = smov 118  }
  0x21   :  { %323 = vmatpush3.msra.mxu0 %v23_v58  ;;  %358 = vmatpush3.msra.mxu1 %v55_v59  ;;  %v293_v6 = vld [vmem:[%s668_s2] ss:$0 sm:$0xff]  ;;  %s420_s2 = smov [#allocation2]  }
  0x22   :  { %324 = vmatprep.subr.mxu0 %v38_v60  ;;  %359 = vmatprep.subr.mxu1 %v70_v61  ;;  %s271_s22 = sshll.u32 %s420_s2, 4  ;;  %s272_s22 = int_to_ptr.vmem [resolvable:$true] %s271_s22 }
  0x23   :  { %325 = vmatpush3.msra.mxu0 %v22_v62  ;;  %157 = vmatprep.mubr.f32.mxu0 %v19_v63  ;;  %s375_s23 = scalar_lea.vmem %s272_s22, 128  ;;  %p380_p1 = scmp.lt.s32.totalorder %s272_s22, %s272_s22 }
  0x24   :  { %360 = vmatpush3.msra.mxu1 %v54_v0  ;;  %227 = vmatprep.mubr.f32.mxu1 %v21_v1  ;;  %p376_p0 = scmp.ne.s32.totalorder %s272_s22, %s375_s23  ;;  %p381_p2 = scmp.lt.s32.totalorder %s375_s23, %s375_s23 }
  0x25   :  { %158 = vmatmul.mubr.f32.vlgmr.msra.gmra.mxu0 %v18_v2  ;;  %228 = vmatmul.mubr.f32.vlgmr.msra.gmra.mxu1 %v20_v3 }
  0x26   :  { %p382_p3 = por %p381_p2, %p380_p1 }
  0x28   :  { %p383_p4 = pnand %p382_p3, %p376_p0 }
  0xe5   :  { %v326_v4 = vpop.f32.mrf.mxu0  ;;  %v361_v5 = vpop.f32.mrf.mxu1 }
  0xe7   :  { %v327_v7 = vpop.f32.mrf.mxu0  ;;  %v362_v8 = vpop.f32.mrf.mxu1 }
  0xe8   :  { %v328_v9 = vadd.f32 %v327_v7, %v326_v4  ;;  %v363_v11 = vadd.f32 %v362_v8, %v361_v5 }
  0xea   :  { %v160_v10 = vadd.f32 %v328_v9, %v293_v6 }
  0xec   :  { %v230_v12 = vadd.f32 %v363_v11, %v160_v10 }
  0xee   :  { %v249_v13 = vsel %vm248_vm0, %v230_v12, -inf  ;;  %234 = vst.msk [vmem:[#allocation2] sm:$0xff] %vm233_vm1, %v230_v12  ;;  %v236_v14 = vsel %vm235_vm2, %v230_v12, -inf }
  0xef   :  { %250 = vmax.xlane.f32.xlu0 %v249_v13 }
  0xf3   :  { %237 = vmax.xlane.f32.xlu0 %v236_v14 }
 0x178   :  { %v251_v15 = vpop.xlane.xlu0 %250 }
 0x179   :  { %v252_v16 = vsub.f32 %v230_v12, %v251_v15 }
 0x17b   :  { %v253_v17 = vmul.f32 1.442695, %v252_v16 }
 0x17c   :  { %v238_v19 = vpop.xlane.xlu0 %237 }
 0x17d   :  { %367 = vpow2.f32 %v253_v17  ;;  %v239_v20 = vsub.f32 %v230_v12, %v238_v19 }
 0x17f   :  { %v240_v21 = vmul.f32 1.442695, %v239_v20 }
 0x181   :  { %369 = vpow2.f32 %v240_v21 }
 0x18a   :  { %v368_v18 = vpop.eup %367 }
 0x18b   :  { %256 = vrot.lane.b32.xlu1 %v368_v18, %s419_s0 }
 0x18e   :  { %v370_v22 = vpop.eup %369 }
 0x18f   :  { %v242_v23 = vsel %vm235_vm2, %v370_v22, 0.0 }
 0x1af   :  { %243 = vadd.xlane.f32.xlu1 %v242_v23 }
 0x1fd   :  { %v257_v24 = vpop.permute.xlu1 %256 }
 0x1fe   :  { %v259_v25 = vsel %vm235_vm2, %v257_v24, 0.0 }
 0x1ff   :  { %260 = vadd.xlane.f32.xlu0 %v259_v25 }
 0x200   :  { %386 = shalt.err (!%p383_p4)
}
 0x201   :  { %274 = dma.vmem_to_hbm [thread:$0]  %s272_s22, 128, %s669_s3, [#allocation3]  }
 0x202   :  { %s421_s26 = smov [#allocation4]  }
 0x203   :  { %s281_s27 = sshll.u32 %s421_s26, 4  ;;  %s282_s27 = int_to_ptr.vmem [resolvable:$true] %s281_s27 }
 0x204   :  { %s395_s28 = scalar_lea.vmem %s282_s27, 128  ;;  %p400_p6 = scmp.lt.s32.totalorder %s282_s27, %s282_s27 }
 0x205   :  { %p396_p5 = scmp.ne.s32.totalorder %s282_s27, %s395_s28  ;;  %p401_p7 = scmp.lt.s32.totalorder %s395_s28, %s395_s28 }
 0x207   :  { %p402_p8 = por %p401_p7, %p400_p6 }
 0x209   :  { %p403_p9 = pnand %p402_p8, %p396_p5 }
 0x238   :  { %v244_v26 = vpop.xlane.xlu1 %243 }
 0x239   :  { %371 = vrcp.f32 %v244_v26 }
 0x246   :  { %v372_v27 = vpop.eup %371 }
 0x247   :  { %v246_v28 = vmul.f32 %v372_v27, %v370_v22 }
 0x249   :  { %247 = vst.msk [vmem:[#allocation4] sm:$0xff] %vm235_vm2, %v246_v28 }
 0x288   :  { %v261_v29 = vpop.xlane.xlu0 %260 }
 0x289   :  { %373 = vrcp.f32 %v261_v29 }
 0x296   :  { %v374_v30 = vpop.eup %373 }
 0x297   :  { %v263_v31 = vmul.f32 %v374_v30, %v368_v18 }
 0x299   :  { %264 = vst.msk [vmem:[#allocation4] sm:$0xff] %vm248_vm0, %v263_v31 }
 0x29a   :  { %406 = shalt.err (!%p403_p9)
}
 0x29b   :  { %284 = dma.vmem_to_hbm [thread:$0]  %s282_s27, 128, %s670_s4, [#allocation5]  }
 0x29c   :  { %415 = dma.done.wait [#allocation3], 128  }
 0x29d   :  { %416 = vsyncadd [#allocation3], 4294967168 }
 0x29e   :  { %417 = dma.done.wait [#allocation5], 128  }
 0x29f   :  { %418 = vsyncadd [#allocation5], 4294967168 }
 0x2a0   :  { %291 = vsyncpa [#allocation3], 1 }
 0x2a1   :  { %292 = vsyncpa [#allocation5], 1 }

</bundles_post_ra>
